<compile_context>
chip_gen: v7x
topology: tpu7x:2x2x1
jax: 0.10.0
libtpu: 0.0.40
codegen_flags: <defaults>
</compile_context>

<pallas_src>
import jax
import jax.numpy as jnp
from jax.experimental import pallas as pl
from jax.experimental.pallas import tpu as pltpu


def _round_up(n, m):
    return ((n + m - 1) // m) * m


def sae_kernel(x_ref, we_t_ref, be_ref, wd_t_ref, bd_ref, enc_ref, dec_ref):
    x = x_ref[...]                                    # (TM, In_p), compute dtype
    # encoded = x @ We^T + be   (We^T already materialized as (In_p, H_p))
    enc = jnp.dot(x, we_t_ref[...],
                  preferred_element_type=jnp.float32) + be_ref[...]
    enc_ref[...] = enc.astype(enc_ref.dtype)
    # decoded = encoded @ Wd^T + bd   (Wd^T already materialized as (H_p, In_p))
    dec = jnp.dot(enc.astype(x.dtype), wd_t_ref[...],
                  preferred_element_type=jnp.float32) + bd_ref[...]
    dec_ref[...] = dec.astype(dec_ref.dtype)


def autoencoder_forward(x, w_enc, b_enc, w_dec, b_dec, compute_dtype=None):
    """Pallas forward pass of the Autoencoder module.

    x:      (B, input_size)
    w_enc:  (hidden_size, input_size), b_enc: (hidden_size,)   [PyTorch layout]
    w_dec:  (input_size, hidden_size), b_dec: (input_size,)    [PyTorch layout]
    compute_dtype: optional matmul-operand dtype (e.g. jnp.bfloat16 on v6e/v7x);
                   accumulation and bias adds remain f32.
    returns (encoded, decoded) with shapes (B, hidden_size), (B, input_size).
    """
    B, in_size = x.shape
    hid_size = w_enc.shape[0]
    out_dtype = x.dtype
    cdt = compute_dtype if compute_dtype is not None else x.dtype

    # Lane-align feature dims to 128; pick an MXU-matched batch tile.
    in_p = _round_up(in_size, 128)
    hid_p = _round_up(hid_size, 128)
    tm = 256 if B >= 256 else _round_up(B, 8)
    b_p = _round_up(B, tm)

    # Zero-pad inputs and pre-transpose weights outside the kernel
    # (zero padding is exact for affine layers; padded outputs are sliced off).
    x_p = jnp.zeros((b_p, in_p), cdt).at[:B, :in_size].set(x.astype(cdt))
    we_t = jnp.zeros((in_p, hid_p), cdt).at[:in_size, :hid_size].set(
        w_enc.T.astype(cdt))
    wd_t = jnp.zeros((hid_p, in_p), cdt).at[:hid_size, :in_size].set(
        w_dec.T.astype(cdt))
    be = jnp.zeros((1, hid_p), jnp.float32).at[0, :hid_size].set(
        b_enc.astype(jnp.float32))
    bd = jnp.zeros((1, in_p), jnp.float32).at[0, :in_size].set(
        b_dec.astype(jnp.float32))

    grid = (b_p // tm,)

    enc_p, dec_p = pl.pallas_call(
        sae_kernel,
        out_shape=(
            jax.ShapeDtypeStruct((b_p, hid_p), out_dtype),
            jax.ShapeDtypeStruct((b_p, in_p), out_dtype),
        ),
        grid_spec=pltpu.PrefetchScalarGridSpec(
            num_scalar_prefetch=0,
            grid=grid,
            in_specs=[
                pl.BlockSpec((tm, in_p), lambda i: (i, 0)),      # x tile
                pl.BlockSpec((in_p, hid_p), lambda i: (0, 0)),   # We^T (resident)
                pl.BlockSpec((1, hid_p), lambda i: (0, 0)),      # be   (resident)
                pl.BlockSpec((hid_p, in_p), lambda i: (0, 0)),   # Wd^T (resident)
                pl.BlockSpec((1, in_p), lambda i: (0, 0)),       # bd   (resident)
            ],
            out_specs=(
                pl.BlockSpec((tm, hid_p), lambda i: (i, 0)),
                pl.BlockSpec((tm, in_p), lambda i: (i, 0)),
            ),
        ),
        compiler_params=pltpu.CompilerParams(
            dimension_semantics=("parallel",)),
    )(x_p, we_t, be, wd_t, bd)

    return enc_p[:B, :hid_size], dec_p[:B, :in_size]


if __name__ == "__main__":
    # Small shapes implied by the module: a batch of flat feature vectors.
    B = 8
    input_size = 256
    hidden_size = 64

    key = jax.random.PRNGKey(0)
    kx, kwe, kbe, kwd, kbd = jax.random.split(key, 5)

    x = jax.random.normal(kx, (B, input_size), dtype=jnp.float32)

    # Deterministic init mimicking PyTorch Linear's uniform(-1/sqrt(fan_in), ..)
    lim_e = 1.0 / jnp.sqrt(jnp.float32(input_size))
    lim_d = 1.0 / jnp.sqrt(jnp.float32(hidden_size))
    w_enc = jax.random.uniform(kwe, (hidden_size, input_size), jnp.float32,
                               -lim_e, lim_e)
    b_enc = jax.random.uniform(kbe, (hidden_size,), jnp.float32, -lim_e, lim_e)
    w_dec = jax.random.uniform(kwd, (input_size, hidden_size), jnp.float32,
                               -lim_d, lim_d)
    b_dec = jax.random.uniform(kbd, (input_size,), jnp.float32, -lim_d, lim_d)

    enc, dec = autoencoder_forward(x, w_enc, b_enc, w_dec, b_dec)
    jax.block_until_ready((enc, dec))

    # Pure-JAX reference check (same semantics as the PyTorch forward).
    enc_ref = x @ w_enc.T + b_enc
    dec_ref = enc_ref @ w_dec.T + b_dec
    assert enc.shape == (B, hidden_size) and dec.shape == (B, input_size)
    assert jnp.allclose(enc, enc_ref, atol=1e-5, rtol=1e-5)
    assert jnp.allclose(dec, dec_ref, atol=1e-5, rtol=1e-5)

    print("KERNEL_OK")
</pallas_src>

<mosaic_0001>
module attributes {stable_mosaic.version = 11 : i64} {
  func.func @sae_kernel(%arg0: i32, %arg1: memref<8x256xf32, #tpu.memory_space<vmem>>, %arg2: memref<256x128xf32, #tpu.memory_space<vmem>>, %arg3: memref<1x128xf32, #tpu.memory_space<vmem>>, %arg4: memref<128x256xf32, #tpu.memory_space<vmem>>, %arg5: memref<1x256xf32, #tpu.memory_space<vmem>>, %arg6: memref<8x128xf32, #tpu.memory_space<vmem>>, %arg7: memref<8x256xf32, #tpu.memory_space<vmem>>) attributes {dimension_semantics = [#tpu.dimension_semantics<parallel>], iteration_bounds = array<i64: 1>, scalar_prefetch = 0 : i64, scratch_operands = 0 : i64, tpu.core_type = #tpu.core_type<tc>, window_params = [{transform_indices = @transform_0, window_bounds = array<i64: 8, 256>}, {pipeline_mode = #tpu.pipeline_mode<synchronous>, transform_indices = @transform_1, window_bounds = array<i64: 256, 128>}, {pipeline_mode = #tpu.pipeline_mode<synchronous>, transform_indices = @transform_2, window_bounds = array<i64: 1, 128>}, {pipeline_mode = #tpu.pipeline_mode<synchronous>, transform_indices = @transform_3, window_bounds = array<i64: 128, 256>}, {pipeline_mode = #tpu.pipeline_mode<synchronous>, transform_indices = @transform_4, window_bounds = array<i64: 1, 256>}, {transform_indices = @transform_5, window_bounds = array<i64: 8, 128>}, {transform_indices = @transform_6, window_bounds = array<i64: 8, 256>}]} {
    %c0 = arith.constant 0 : index
    %c0_0 = arith.constant 0 : index
    %0 = vector.load %arg1[%c0, %c0_0] : memref<8x256xf32, #tpu.memory_space<vmem>>, vector<8x256xf32>
    %c0_1 = arith.constant 0 : index
    %c0_2 = arith.constant 0 : index
    %1 = vector.load %arg2[%c0_1, %c0_2] : memref<256x128xf32, #tpu.memory_space<vmem>>, vector<256x128xf32>
    %cst = arith.constant dense<0.000000e+00> : vector<8x128xf32>
    %2 = tpu.matmul %0, %1, %cst {dimension_numbers = #tpu.dot_dimension_numbers<[1], [0], [0], [1], [0, 0, 1, 1], [], []>} : vector<8x256xf32>, vector<256x128xf32>, vector<8x128xf32> -> vector<8x128xf32>
    %c0_3 = arith.constant 0 : index
    %c0_4 = arith.constant 0 : index
    %3 = vector.load %arg3[%c0_3, %c0_4] : memref<1x128xf32, #tpu.memory_space<vmem>>, vector<1x128xf32>
    %4 = vector.broadcast %3 : vector<1x128xf32> to vector<8x128xf32>
    %5 = arith.addf %2, %4 : vector<8x128xf32>
    %c0_5 = arith.constant 0 : index
    %c0_6 = arith.constant 0 : index
    %6 = vector.load %arg6[%c0_5, %c0_6] : memref<8x128xf32, #tpu.memory_space<vmem>>, vector<8x128xf32>
    tpu.vector_store %arg6[%c0_5, %c0_6], %5 {strides = array<i32>} : memref<8x128xf32, #tpu.memory_space<vmem>>, vector<8x128xf32>,
    %c0_7 = arith.constant 0 : index
    %c0_8 = arith.constant 0 : index
    %7 = vector.load %arg4[%c0_7, %c0_8] : memref<128x256xf32, #tpu.memory_space<vmem>>, vector<128x256xf32>
    %cst_9 = arith.constant dense<0.000000e+00> : vector<8x256xf32>
    %8 = tpu.matmul %5, %7, %cst_9 {dimension_numbers = #tpu.dot_dimension_numbers<[1], [0], [0], [1], [0, 0, 1, 1], [], []>} : vector<8x128xf32>, vector<128x256xf32>, vector<8x256xf32> -> vector<8x256xf32>
    %c0_10 = arith.constant 0 : index
    %c0_11 = arith.constant 0 : index
    %9 = vector.load %arg5[%c0_10, %c0_11] : memref<1x256xf32, #tpu.memory_space<vmem>>, vector<1x256xf32>
    %10 = vector.broadcast %9 : vector<1x256xf32> to vector<8x256xf32>
    %11 = arith.addf %8, %10 : vector<8x256xf32>
    %c0_12 = arith.constant 0 : index
    %c0_13 = arith.constant 0 : index
    %12 = vector.load %arg7[%c0_12, %c0_13] : memref<8x256xf32, #tpu.memory_space<vmem>>, vector<8x256xf32>
    tpu.vector_store %arg7[%c0_12, %c0_13], %11 {strides = array<i32>} : memref<8x256xf32, #tpu.memory_space<vmem>>, vector<8x256xf32>,
    return
  }
  func.func @transform_0(%arg0: i32) -> (i32, i32) {
    %c0_i32 = arith.constant 0 : i32
    %c0_i32_0 = arith.constant 0 : i32
    return %arg0, %c0_i32 : i32, i32
  }
  func.func @transform_1(%arg0: i32) -> (i32, i32) {
    %c0_i32 = arith.constant 0 : i32
    %c0_i32_0 = arith.constant 0 : i32
    %c0_i32_1 = arith.constant 0 : i32
    return %c0_i32, %c0_i32_0 : i32, i32
  }
  func.func @transform_2(%arg0: i32) -> (i32, i32) {
    %c0_i32 = arith.constant 0 : i32
    %c0_i32_0 = arith.constant 0 : i32
    %c0_i32_1 = arith.constant 0 : i32
    return %c0_i32, %c0_i32_0 : i32, i32
  }
  func.func @transform_3(%arg0: i32) -> (i32, i32) {
    %c0_i32 = arith.constant 0 : i32
    %c0_i32_0 = arith.constant 0 : i32
    %c0_i32_1 = arith.constant 0 : i32
    return %c0_i32, %c0_i32_0 : i32, i32
  }
  func.func @transform_4(%arg0: i32) -> (i32, i32) {
    %c0_i32 = arith.constant 0 : i32
    %c0_i32_0 = arith.constant 0 : i32
    %c0_i32_1 = arith.constant 0 : i32
    return %c0_i32, %c0_i32_0 : i32, i32
  }
  func.func @transform_5(%arg0: i32) -> (i32, i32) {
    %c0_i32 = arith.constant 0 : i32
    %c0_i32_0 = arith.constant 0 : i32
    return %arg0, %c0_i32 : i32, i32
  }
  func.func @transform_6(%arg0: i32) -> (i32, i32) {
    %c0_i32 = arith.constant 0 : i32
    %c0_i32_0 = arith.constant 0 : i32
    return %arg0, %c0_i32 : i32, i32
  }
}

</mosaic_0001>

<bundles_post_ra>
// kernel: tpu_custom_call.1
= control target key start
LH: loop header
LB: loop body
LE: loop exit
PB: predicated region body
PF: predicated region fallthrough
CT: control target
= control target key end

     0   :  { %12 = vsyncpa [#allocation3], 0  ;;  %s661_s0 = inlined_call_operand.hbm [shape: f32[8,256], index: 0, kind: input, shape index: {}]   ;;  %s662_s1 = inlined_call_operand.hbm [shape: f32[256,128], index: 1, kind: input, shape index: {}]   ;;  %s663_s2 = inlined_call_operand.vmem [shape: f32[1,128], index: 2, kind: input, shape index: {}]   ;;  %s664_s3 = inlined_call_operand.hbm [shape: f32[128,256], index: 3, kind: input, shape index: {}]   ;;  %s665_s4 = inlined_call_operand.vmem [shape: f32[1,256], index: 4, kind: input, shape index: {}]   ;;  %s666_s5 = inlined_call_operand.hbm [shape: f32[8,128], index: 5, kind: output, shape index: {0}]   ;;  %s667_s6 = inlined_call_operand.hbm [shape: f32[8,256], index: 6, kind: output, shape index: {1}]  }
   0x1   :  { %13 = vsyncpa [#allocation6], 0 }
   0x2   :  { %14 = vsyncpa [#allocation4], 0 }
   0x3   :  { %15 = vsyncpa [#allocation10], 0  ;;  %s550_s21 = smov [#allocation5]   ;;  %s432_s25 = scalar_lea.hbm %s662_s1, 4096 }
   0x4   :  { %s31_s22 = sshll.u32 %s550_s21, 4  ;;  %p433_p0 = scmp.ne.s32.totalorder %s662_s1, %s432_s25  ;;  %s32_s22 = int_to_ptr.vmem [resolvable:$true] %s31_s22 }
   0x5   :  { %p436_p1 = scmp.lt.u32.totalorder %s432_s25, %s662_s1 }
   0x7   :  { %p438_p2 = pnand %p436_p1, %p433_p0 }
   0x9   :  { %441 = shalt.err (!%p438_p2)
}
   0xa   :  { %s442_s30 = scalar_lea.vmem %s32_s22, 4096  ;;  %p447_p4 = scmp.lt.s32.totalorder %s32_s22, %s32_s22 }
   0xb   :  { %p443_p3 = scmp.ne.s32.totalorder %s32_s22, %s442_s30  ;;  %p448_p5 = scmp.lt.s32.totalorder %s442_s30, %s442_s30 }
   0xd   :  { %p449_p6 = por %p448_p5, %p447_p4 }
   0xf   :  { %p450_p7 = pnand %p449_p6, %p443_p3 }
  0x11   :  { %453 = shalt.err (!%p450_p7)
}
  0x12   :  { %s551_s7 = smov 128   ;;  %s552_s8 = smov 8  }
  0x13   :  { %37 = dma.hbm_to_vmem [thread:$0]  %s662_s1, 4096, %s32_s22, [#allocation6], %s551_s7, %s551_s7, %s552_s8  }
  0x14   :  { %s553_s11 = smov [#allocation2]   ;;  %s554_s13 = smov [#allocation7]  }
  0x15   :  { %s22_s12 = sshll.u32 %s553_s11, 4  ;;  %s45_s14 = sshll.u32 %s554_s13, 4  ;;  %s23_s12 = int_to_ptr.vmem [resolvable:$true] %s22_s12  ;;  %s46_s14 = int_to_ptr.vmem [resolvable:$true] %s45_s14 }
  0x16   :  { %s454_s17 = scalar_lea.hbm %s661_s0, 256 }
  0x17   :  { %p455_p8 = scmp.ne.s32.totalorder %s661_s0, %s454_s17  ;;  %p458_p9 = scmp.lt.u32.totalorder %s454_s17, %s661_s0 }
  0x19   :  { %p460_p10 = pnand %p458_p9, %p455_p8 }
  0x1b   :  { %463 = shalt.err (!%p460_p10)
}
  0x1c   :  { %s464_s1 = scalar_lea.vmem %s23_s12, 256  ;;  %p469_p12 = scmp.lt.s32.totalorder %s23_s12, %s23_s12 }
  0x1d   :  { %p465_p11 = scmp.ne.s32.totalorder %s23_s12, %s464_s1  ;;  %p470_p13 = scmp.lt.s32.totalorder %s464_s1, %s464_s1 }
  0x1f   :  { %p471_p0 = por %p470_p13, %p469_p12 }
  0x21   :  { %p472_p1 = pnand %p471_p0, %p465_p11 }
  0x23   :  { %475 = shalt.err (!%p472_p1)
}
  0x24   :  { %25 = dma.hbm_to_vmem [thread:$0]  %s661_s0, 256, %s23_s12, [#allocation3]  }
  0x25   :  { %s476_s26 = scalar_lea.hbm %s664_s3, 4096 }
  0x26   :  { %p477_p2 = scmp.ne.s32.totalorder %s664_s3, %s476_s26  ;;  %p480_p3 = scmp.lt.u32.totalorder %s476_s26, %s664_s3 }
  0x28   :  { %p482_p4 = pnand %p480_p3, %p477_p2 }
  0x2a   :  { %485 = shalt.err (!%p482_p4)
}
  0x2b   :  { %s486_s7 = scalar_lea.vmem %s46_s14, 4096  ;;  %p491_p6 = scmp.lt.s32.totalorder %s46_s14, %s46_s14 }
  0x2c   :  { %p487_p5 = scmp.ne.s32.totalorder %s46_s14, %s486_s7  ;;  %p492_p7 = scmp.lt.s32.totalorder %s486_s7, %s486_s7 }
  0x2e   :  { %p493_p8 = por %p492_p7, %p491_p6 }
  0x30   :  { %p494_p9 = pnand %p493_p8, %p487_p5 }
  0x32   :  { %497 = shalt.err (!%p494_p9)
}
  0x33   :  { %s555_s0 = smov 256   ;;  %s556_s8 = smov 16  }
  0x34   :  { %51 = dma.hbm_to_vmem [thread:$0]  %s664_s3, 4096, %s46_s14, [#allocation6], %s555_s0, %s555_s0, %s556_s8  }
  0x35   :  { %542 = dma.done.wait [#allocation3], 256  }
  0x36   :  { %543 = vsyncadd [#allocation3], 4294967040 }
  0x37   :  { %544 = dma.done.wait [#allocation6], 8192  }
  0x38   :  { %545 = vsyncadd [#allocation6], 4294959104  ;;  %v81_v0 = vld [vmem:[#allocation5 + $0x80] sm:$0xff]  ;;  %v82_v1 = vld [vmem:[#allocation5 + $0x88] sm:$0xff]  ;;  %s558_s12 = smov [#allocation8]  }
  0x39   :  { %v65_v2 = vld [vmem:[#allocation5] sm:$0xff]  ;;  %v358_v3 = vpack.c.bf16 %v82_v1, %v81_v0  ;;  %v66_v4 = vld [vmem:[#allocation5 + $0x8] sm:$0xff]  ;;  %v83_v5 = vld [vmem:[#allocation5 + $0x90] sm:$0xff]  ;;  %s298_s13 = sshll.u32 %s558_s12, 4  ;;  %s299_s13 = int_to_ptr.vmem [resolvable:$true] %s298_s13 }
  0x3a   :  { %v84_v6 = vld [vmem:[#allocation5 + $0x98] sm:$0xff]  ;;  %v360_v7 = vpack.c.bf16 %v66_v4, %v65_v2  ;;  %v67_v9 = vld [vmem:[#allocation5 + $0x10] sm:$0xff]  ;;  %v85_v11 = vld [vmem:[#allocation5 + $0xa0] sm:$0xff]  ;;  %s498_s14 = scalar_lea.vmem %s299_s13, 128  ;;  %p503_p11 = scmp.lt.s32.totalorder %s299_s13, %s299_s13 }
  0x3b   :  { %v362_v8 = vpack.c.bf16 %v84_v6, %v83_v5  ;;  %v68_v10 = vld [vmem:[#allocation5 + $0x18] sm:$0xff]  ;;  %359 = vmatprep.subr.bf16.mxu0 %v358_v3  ;;  %v86_v12 = vld [vmem:[#allocation5 + $0xa8] sm:$0xff]  ;;  %v69_v15 = vld [vmem:[#allocation5 + $0x20] sm:$0xff]  ;;  %p499_p10 = scmp.ne.s32.totalorder %s299_s13, %s498_s14  ;;  %p504_p12 = scmp.lt.s32.totalorder %s498_s14, %s498_s14 }
  0x3c   :  { %361 = vmatpush3.bf16.msra.mxu0 %v360_v7  ;;  %v364_v13 = vpack.c.bf16 %v68_v10, %v67_v9  ;;  %v366_v14 = vpack.c.bf16 %v86_v12, %v85_v11  ;;  %v70_v16 = vld [vmem:[#allocation5 + $0x28] sm:$0xff]  ;;  %v87_v17 = vld [vmem:[#allocation5 + $0xb0] sm:$0xff]  ;;  %v88_v18 = vld [vmem:[#allocation5 + $0xb8] sm:$0xff] }
  0x3d   :  { %363 = vmatprep.subr.bf16.mxu0 %v362_v8  ;;  %v368_v19 = vpack.c.bf16 %v70_v16, %v69_v15  ;;  %v370_v20 = vpack.c.bf16 %v88_v18, %v87_v17  ;;  %v71_v21 = vld [vmem:[#allocation5 + $0x30] sm:$0xff]  ;;  %v72_v22 = vld [vmem:[#allocation5 + $0x38] sm:$0xff]  ;;  %v89_v23 = vld [vmem:[#allocation5 + $0xc0] sm:$0xff]  ;;  %p505_p13 = por %p504_p12, %p503_p11 }
  0x3e   :  { %v90_v24 = vld [vmem:[#allocation5 + $0xc8] sm:$0xff]  ;;  %v64_v25 = vld [vmem:[#allocation2 + $0x8] sm:$0xff]  ;;  %v73_v26 = vld [vmem:[#allocation5 + $0x40] sm:$0xff]  ;;  %v372_v30 = vpack.c.bf16 %v72_v22, %v71_v21 }
  0x3f   :  { %v74_v27 = vld [vmem:[#allocation5 + $0x48] sm:$0xff]  ;;  %168 = vmatprep.mubr.f32.mxu0 %v64_v25  ;;  %v178_v29 = vld [vmem:[#allocation7 + $0x18] sm:$0xff]  ;;  %v91_v31 = vld [vmem:[#allocation5 + $0xd0] sm:$0xff]  ;;  %v374_v36 = vpack.c.bf16 %v90_v24, %v89_v23  ;;  %p506_p0 = pnand %p505_p13, %p499_p10 }
  0x40   :  { %365 = vmatpush3.bf16.msra.mxu0 %v364_v13  ;;  %v176_v28 = vld [vmem:[#allocation7 + $0x8] sm:$0xff]  ;;  %v175_v33 = vld [vmem:[#allocation7] sm:$0xff]  ;;  %v177_v34 = vld [vmem:[#allocation7 + $0x10] sm:$0xff]  ;;  %v376_v46 = vpack.c.bf16 %v74_v27, %v73_v26 }
  0x41   :  { %367 = vmatprep.subr.bf16.mxu0 %v366_v14  ;;  %v390_v32 = vpack.c.bf16 %v178_v29, %v176_v28  ;;  %v180_v35 = vld [vmem:[#allocation7 + $0x28] sm:$0xff]  ;;  %v392_v37 = vpack.c.bf16 %v177_v34, %v175_v33  ;;  %v182_v38 = vld [vmem:[#allocation7 + $0x38] sm:$0xff]  ;;  %v179_v39 = vld [vmem:[#allocation7 + $0x20] sm:$0xff]  ;;  %v557_v34 = vmov 0.0  }
  0x42   :  { %v181_v40 = vld [vmem:[#allocation7 + $0x30] sm:$0xff]  ;;  %v92_v41 = vld [vmem:[#allocation5 + $0xd8] sm:$0xff]  ;;  %v394_v42 = vpack.c.bf16 %v182_v38, %v180_v35  ;;  %v184_v43 = vld [vmem:[#allocation7 + $0x48] sm:$0xff]  ;;  %283 = vmatprep.mubr.f32.mxu1 %v557_v34 }
  0x43   :  { %391 = vmatprep.subr.bf16.mxu1 %v390_v32  ;;  %v186_v44 = vld [vmem:[#allocation7 + $0x58] sm:$0xff]  ;;  %v396_v45 = vpack.c.bf16 %v181_v40, %v179_v39  ;;  %v75_v47 = vld [vmem:[#allocation5 + $0x50] sm:$0xff]  ;;  %v183_v49 = vld [vmem:[#allocation7 + $0x40] sm:$0xff]  ;;  %v378_v51 = vpack.c.bf16 %v92_v41, %v91_v31 }
  0x44   :  { %369 = vmatpush3.bf16.msra.mxu0 %v368_v19  ;;  %393 = vmatpush1.bf16.msra.mxu1 %v392_v37  ;;  %v398_v48 = vpack.c.bf16 %v186_v44, %v184_v43  ;;  %v185_v50 = vld [vmem:[#allocation7 + $0x50] sm:$0xff]  ;;  %v76_v52 = vld [vmem:[#allocation5 + $0x58] sm:$0xff]  ;;  %v188_v53 = vld [vmem:[#allocation7 + $0x68] sm:$0xff] }
  0x45   :  { %371 = vmatprep.subr.bf16.mxu0 %v370_v20  ;;  %395 = vmatprep.subr.bf16.mxu1 %v394_v42  ;;  %v190_v54 = vld [vmem:[#allocation7 + $0x78] sm:$0xff]  ;;  %v93_v55 = vld [vmem:[#allocation5 + $0xe0] sm:$0xff]  ;;  %v94_v56 = vld [vmem:[#allocation5 + $0xe8] sm:$0xff]  ;;  %v400_v57 = vpack.c.bf16 %v185_v50, %v183_v49  ;;  %v380_v58 = vpack.c.bf16 %v76_v52, %v75_v47 }
  0x46   :  { %v77_v59 = vld [vmem:[#allocation5 + $0x60] sm:$0xff]  ;;  %v402_v60 = vpack.c.bf16 %v190_v54, %v188_v53  ;;  %v189_v62 = vld [vmem:[#allocation7 + $0x70] sm:$0xff]  ;;  %v382_v63 = vpack.c.bf16 %v94_v56, %v93_v55  ;;  %v78_v0 = vld [vmem:[#allocation5 + $0x68] sm:$0xff] }
  0x47   :  { %v187_v61 = vld [vmem:[#allocation7 + $0x60] sm:$0xff]  ;;  %v192_v1 = vld [vmem:[#allocation7 + $0x88] sm:$0xff]  ;;  %v194_v2 = vld [vmem:[#allocation7 + $0x98] sm:$0xff]  ;;  %v384_v6 = vpack.c.bf16 %v78_v0, %v77_v59 }
  0x48   :  { %373 = vmatpush3.bf16.msra.mxu0 %v372_v30  ;;  %397 = vmatpush1.bf16.msra.mxu1 %v396_v45  ;;  %v95_v3 = vld [vmem:[#allocation5 + $0xf0] sm:$0xff]  ;;  %v96_v4 = vld [vmem:[#allocation5 + $0xf8] sm:$0xff]  ;;  %v404_v5 = vpack.c.bf16 %v189_v62, %v187_v61  ;;  %v406_v8 = vpack.c.bf16 %v194_v2, %v192_v1  ;;  %v191_v9 = vld [vmem:[#allocation7 + $0x80] sm:$0xff] }
  0x49   :  { %375 = vmatprep.subr.bf16.mxu0 %v374_v36  ;;  %399 = vmatprep.subr.bf16.mxu1 %v398_v48  ;;  %v79_v7 = vld [vmem:[#allocation5 + $0x70] sm:$0xff]  ;;  %v386_v11 = vpack.c.bf16 %v96_v4, %v95_v3  ;;  %v80_v12 = vld [vmem:[#allocation5 + $0x78] sm:$0xff]  ;;  %v196_v13 = vld [vmem:[#allocation7 + $0xa8] sm:$0xff] }
  0x4a   :  { %v193_v10 = vld [vmem:[#allocation7 + $0x90] sm:$0xff]  ;;  %v198_v14 = vld [vmem:[#allocation7 + $0xb8] sm:$0xff]  ;;  %v388_v16 = vpack.c.bf16 %v80_v12, %v79_v7  ;;  %v195_v18 = vld [vmem:[#allocation7 + $0xa0] sm:$0xff] }
  0x4b   :  { %v408_v15 = vpack.c.bf16 %v193_v10, %v191_v9  ;;  %v410_v17 = vpack.c.bf16 %v198_v14, %v196_v13  ;;  %v197_v19 = vld [vmem:[#allocation7 + $0xb0] sm:$0xff]  ;;  %v200_v20 = vld [vmem:[#allocation7 + $0xc8] sm:$0xff]  ;;  %v202_v21 = vld [vmem:[#allocation7 + $0xd8] sm:$0xff] }
  0x4c   :  { %377 = vmatpush3.bf16.msra.mxu0 %v376_v46  ;;  %401 = vmatpush1.bf16.msra.mxu1 %v400_v57  ;;  %v412_v22 = vpack.c.bf16 %v197_v19, %v195_v18  ;;  %v63_v23 = vld [vmem:[#allocation2] sm:$0xff]  ;;  %v414_v24 = vpack.c.bf16 %v202_v21, %v200_v20  ;;  %v199_v25 = vld [vmem:[#allocation7 + $0xc0] sm:$0xff]  ;;  %v204_v28 = vld [vmem:[#allocation7 + $0xe8] sm:$0xff] }
  0x4d   :  { %379 = vmatprep.subr.bf16.mxu0 %v378_v51  ;;  %403 = vmatprep.subr.bf16.mxu1 %v402_v60  ;;  %v201_v26 = vld [vmem:[#allocation7 + $0xd0] sm:$0xff]  ;;  %v206_v29 = vld [vmem:[#allocation7 + $0xf8] sm:$0xff]  ;;  %v203_v31 = vld [vmem:[#allocation7 + $0xe0] sm:$0xff] }
  0x4e   :  { %v416_v27 = vpack.c.bf16 %v201_v26, %v199_v25  ;;  %v418_v30 = vpack.c.bf16 %v206_v29, %v204_v28  ;;  %v205_v32 = vld [vmem:[#allocation7 + $0xf0] sm:$0xff] }
  0x4f   :  { %v420_v33 = vpack.c.bf16 %v205_v32, %v203_v31  ;;  %v322_v36 = vld [vmem:[%s663_s2] ss:$0 sm:$0xff] }
  0x50   :  { %381 = vmatpush3.bf16.msra.mxu0 %v380_v58  ;;  %405 = vmatpush1.bf16.msra.mxu1 %v404_v5 }
  0x51   :  { %383 = vmatprep.subr.bf16.mxu0 %v382_v63  ;;  %407 = vmatprep.subr.bf16.mxu1 %v406_v8 }
  0x54   :  { %385 = vmatpush3.bf16.msra.mxu0 %v384_v6  ;;  %409 = vmatpush1.bf16.msra.mxu1 %v408_v15 }
  0x55   :  { %387 = vmatprep.subr.bf16.mxu0 %v386_v11  ;;  %411 = vmatprep.subr.bf16.mxu1 %v410_v17 }
  0x58   :  { %389 = vmatpush3.bf16.msra.mxu0 %v388_v16  ;;  %413 = vmatpush1.bf16.msra.mxu1 %v412_v22 }
  0x59   :  { %415 = vmatprep.subr.bf16.mxu1 %v414_v24 }
  0x5b   :  { %169 = vmatmul.mubr.f32.vlgmr.msra.gmra.mrb[0].mxu0 %v63_v23 }
  0x5c   :  { %417 = vmatpush1.bf16.msra.mxu1 %v416_v27 }
  0x5d   :  { %419 = vmatprep.subr.bf16.mxu1 %v418_v30 }
  0x60   :  { %421 = vmatpush1.bf16.msra.mxu1 %v420_v33 }
 0x12e   :  { %v355_v35 = vpop.f32.mrb[0].mxu0 }
 0x12f   :  { %v356_v37 = vpop.f32.mrb[1].mxu0 }
 0x130   :  { %v357_v38 = vadd.f32 %v356_v37, %v355_v35 }
 0x132   :  { %v171_v39 = vadd.f32 %v357_v38, %v322_v36 }
 0x134   :  { %174 = vst [vmem:[#allocation8] sm:$0xff] %v171_v39  ;;  %284 = vmatmul.mubr.f32.vlgmr.msra.gmra.mrb[0].mxu1 %v171_v39 }
 0x135   :  { %509 = shalt.err (!%p506_p0)
}
 0x136   :  { %s510_s17 = scalar_lea.hbm %s666_s5, 128 }
 0x137   :  { %p511_p1 = scmp.ne.s32.totalorder %s666_s5, %s510_s17  ;;  %p514_p2 = scmp.lt.u32.totalorder %s510_s17, %s666_s5 }
 0x139   :  { %p516_p3 = pnand %p514_p2, %p511_p1 }
 0x13b   :  { %519 = shalt.err (!%p516_p3)
}
 0x13c   :  { %301 = dma.vmem_to_hbm [thread:$0]  %s299_s13, 128, %s666_s5, [#allocation4]   ;;  %v209_v40 = vlaneseq  ;;  %v207_v43 = vld [vmem:[%s665_s4] sm:$0x3] }
 0x13d   :  { %s559_s24 = smov [#allocation9]  }
 0x13e   :  { %v210_v41 = vshrl.u32 %v209_v40, 7  ;;  %s308_s25 = sshll.u32 %s559_s24, 4  ;;  %s309_s25 = int_to_ptr.vmem [resolvable:$true] %s308_s25 }
 0x13f   :  { %s520_s5 = scalar_lea.vmem %s309_s25, 256  ;;  %p525_p5 = scmp.lt.s32.totalorder %s309_s25, %s309_s25 }
 0x140   :  { %v211_v42 = vsub.s32 0, %v210_v41  ;;  %v215_v44 = vsub.s32 1, %v210_v41  ;;  %p521_p4 = scmp.ne.s32.totalorder %s309_s25, %s520_s5  ;;  %p526_p6 = scmp.lt.s32.totalorder %s520_s5, %s520_s5 }
 0x142   :  { %v212_v45 = vrot.slane %v207_v43, %v211_v42  ;;  %v216_v46 = vrot.slane %v207_v43, %v215_v44  ;;  %p527_p7 = por %p526_p6, %p525_p5 }
 0x144   :  { %p528_p8 = pnand %p527_p7, %p521_p4 }
 0x207   :  { %v285_v47 = vpop.f32.mrb[0].mxu1 }
 0x208   :  { %v286_v48 = vadd.f32 %v285_v47, %v212_v45  ;;  %v287_v49 = vpop.f32.mrb[1].mxu1 }
 0x209   :  { %v288_v50 = vadd.f32 %v287_v49, %v216_v46 }
 0x20a   :  { %290 = vst [vmem:[#allocation9] sm:$0xff] %v286_v48 }
 0x20b   :  { %291 = vst [vmem:[#allocation9 + $0x8] sm:$0xff] %v288_v50 }
 0x20c   :  { %531 = shalt.err (!%p528_p8)
}
 0x20d   :  { %s532_s27 = scalar_lea.hbm %s667_s6, 256 }
 0x20e   :  { %p533_p9 = scmp.ne.s32.totalorder %s667_s6, %s532_s27  ;;  %p536_p10 = scmp.lt.u32.totalorder %s532_s27, %s667_s6 }
 0x210   :  { %p538_p11 = pnand %p536_p10, %p533_p9 }
 0x212   :  { %541 = shalt.err (!%p538_p11)
}
 0x213   :  { %311 = dma.vmem_to_hbm [thread:$0]  %s309_s25, 256, %s667_s6, [#allocation10]  }
 0x214   :  { %546 = dma.done.wait [#allocation4], 128  }
 0x215   :  { %547 = vsyncadd [#allocation4], 4294967168 }
 0x216   :  { %548 = dma.done.wait [#allocation10], 256  }
 0x217   :  { %549 = vsyncadd [#allocation10], 4294967040 }
 0x218   :  { %318 = vsyncpa [#allocation3], 1 }
 0x219   :  { %319 = vsyncpa [#allocation6], 1 }
 0x21a   :  { %320 = vsyncpa [#allocation4], 1 }
 0x21b   :  { %321 = vsyncpa [#allocation10], 1 }

</bundles_post_ra>
